<compile_context>
chip_gen: v5e
topology: v5e:2x2
jax: 0.10.0
libtpu: 0.0.40
codegen_flags: <defaults>
</compile_context>

<pallas_src>
import jax
import jax.numpy as jnp
from jax.experimental import pallas as pl
from jax.experimental.pallas import tpu as pltpu

HIDDEN = 100
LANE = 128                 # lane width; hidden is padded up to a multiple of this
N_CLASSES = 4
MAX_BLOCK_B = 2048         # upper bound on the batch tile
VMEM_BUDGET = 24 * 1024 * 1024   # per-core working-set target (v7x-safe)


def _round_up(n, m):
    return ((n + m - 1) // m) * m


# --------------------------------------------------------------------------
# Kernel
# --------------------------------------------------------------------------
def _stance_kernel(x_ref, w1_ref, b1_ref, w2_ref, b2_ref, o_ref):
    # One batch tile per grid step; weights/biases are VMEM-resident.
    x = x_ref[...]                                                    # [TB, E]
    w1 = w1_ref[...]                                                  # [E, Hp]
    if w1.dtype == jnp.bfloat16 and x.dtype != jnp.bfloat16:
        # In-kernel cast: feeds the MXU bf16 without an extra wrapper HBM pass.
        x = x.astype(jnp.bfloat16)
    h = jnp.dot(x, w1, preferred_element_type=jnp.float32)            # [TB, Hp] f32
    h = jnp.maximum(h + b1_ref[...], 0.0)                             # bias + ReLU (dropout = id)
    logits = jnp.dot(h, w2_ref[...],
                     preferred_element_type=jnp.float32)              # [TB, 4]
    logits = logits + b2_ref[...]
    # log_softmax over the class dim (numerically stable, all f32).
    m = jnp.max(logits, axis=-1, keepdims=True)
    shifted = logits - m
    lse = jnp.log(jnp.sum(jnp.exp(shifted), axis=-1, keepdims=True))
    o_ref[...] = (shifted - lse).astype(o_ref.dtype)


# --------------------------------------------------------------------------
# One-time parameter preparation (hoisted off the per-call hot path)
# --------------------------------------------------------------------------
def prepare_params(w1, b1, w2, b2, *, use_bf16=False):
    """Pad hidden dim to a multiple of 128 and (optionally) cast w1 to bf16.

    w1: [E, H] (pre-transposed vs. PyTorch), b1: [1, H]
    w2: [H, 4],                               b2: [1, 4]
    Call once and reuse the result for every forward call.
    """
    E, H = w1.shape
    assert b1.shape == (1, H)
    assert w2.shape[0] == H and w2.shape[1] == N_CLASSES
    assert b2.shape == (1, N_CLASSES)
    h_pad = max(_round_up(H, LANE), LANE)
    if H < h_pad:
        w1 = jnp.pad(w1, ((0, 0), (0, h_pad - H)))
        b1 = jnp.pad(b1, ((0, 0), (0, h_pad - H)))
        w2 = jnp.pad(w2, ((0, h_pad - H), (0, 0)))
    if use_bf16:
        w1 = w1.astype(jnp.bfloat16)
    return w1, b1, w2, b2


# --------------------------------------------------------------------------
# Forward pass
# --------------------------------------------------------------------------
def stance_detection_forward(x, w1, b1, w2, b2, *, block_b=None):
    """Forward pass (params must come from prepare_params).

    x:  [B, E] float32 or bfloat16
    Returns log-probabilities [B, 4] float32.
    """
    B, E = x.shape
    assert w1.shape[0] == E, "w1 must be [E, hidden_padded]"
    H_pad = w1.shape[1]
    assert H_pad % LANE == 0, "hidden dim must be pre-padded via prepare_params"
    assert w2.shape == (H_pad, N_CLASSES)

    x_itemsize = jnp.dtype(x.dtype).itemsize
    w1_itemsize = jnp.dtype(w1.dtype).itemsize
    w1_bytes = E * H_pad * w1_itemsize

    # --- Batch tile: biggest tile that keeps 2x(double-buffered x) + resident
    #     w1 under the per-core VMEM budget, capped at MAX_BLOCK_B, and capped
    #     so the grid has >=2 steps (v7x megacore) whenever B allows.
    if block_b is None:
        avail = max(VMEM_BUDGET - w1_bytes, 1 << 20)
        tb = avail // (2 * E * x_itemsize)
        tb = max(min(int(tb), MAX_BLOCK_B), 8)
    else:
        tb = int(block_b)
    tb = min(tb, _round_up(pl.cdiv(B, 2), 8))   # >=2 grid steps when B > 8
    tb = _round_up(max(tb, 8), 8)
    grid = (pl.cdiv(B, tb),)
    # NOTE: the ragged last block computes garbage rows past B (may be NaN/Inf
    # after log_softmax); they are masked on writeback and never consumed.

    # --- Explicit VMEM limit (don't rely on the scoped default).
    vmem_need = (2 * tb * E * x_itemsize                 # double-buffered x tiles
                 + w1_bytes                              # resident w1
                 + (H_pad + H_pad * N_CLASSES + N_CLASSES) * 4   # b1, w2, b2
                 + 2 * tb * N_CLASSES * 4)               # double-buffered output
    vmem_limit = int(min(max(2 * vmem_need, 16 << 20), 48 << 20))

    param_bytes = (w1_bytes + (b1.size + w2.size + b2.size) * 4)
    cost = pl.CostEstimate(
        flops=2 * B * (E * H_pad + H_pad * N_CLASSES),
        transcendentals=B * (N_CLASSES + 1),
        bytes_accessed=B * E * x_itemsize + param_bytes + B * N_CLASSES * 4,
    )

    return pl.pallas_call(
        _stance_kernel,
        out_shape=jax.ShapeDtypeStruct((B, N_CLASSES), jnp.float32),
        grid=grid,
        in_specs=[
            pl.BlockSpec((tb, E), lambda i: (i, 0)),                  # x tile (pipelined)
            pl.BlockSpec((E, H_pad), lambda i: (0, 0)),               # w1 (resident)
            pl.BlockSpec((1, H_pad), lambda i: (0, 0)),               # b1 (resident)
            pl.BlockSpec((H_pad, N_CLASSES), lambda i: (0, 0)),       # w2 (resident)
            pl.BlockSpec((1, N_CLASSES), lambda i: (0, 0)),           # b2 (resident)
        ],
        out_specs=pl.BlockSpec((tb, N_CLASSES), lambda i: (i, 0)),
        compiler_params=pltpu.CompilerParams(
            dimension_semantics=("parallel",),                        # megacore on v7x
            vmem_limit_bytes=vmem_limit,
        ),
        cost_estimate=cost,
    )(x, w1, b1, w2, b2)


# --------------------------------------------------------------------------
# Helpers / reference / test driver
# --------------------------------------------------------------------------
def init_params(key, embedding_dim, hidden=HIDDEN, n_classes=N_CLASSES):
    k1, k2, k3, k4 = jax.random.split(key, 4)
    # PyTorch-style uniform init bounds.
    bound1 = 1.0 / jnp.sqrt(embedding_dim)
    bound2 = 1.0 / jnp.sqrt(hidden)
    w1 = jax.random.uniform(k1, (embedding_dim, hidden), jnp.float32, -bound1, bound1)
    b1 = jax.random.uniform(k2, (1, hidden), jnp.float32, -bound1, bound1)
    w2 = jax.random.uniform(k3, (hidden, n_classes), jnp.float32, -bound2, bound2)
    b2 = jax.random.uniform(k4, (1, n_classes), jnp.float32, -bound2, bound2)
    return w1, b1, w2, b2


def _reference(x, w1, b1, w2, b2):
    h = jnp.maximum(x @ w1 + b1, 0.0)
    return jax.nn.log_softmax(h @ w2 + b2, axis=-1)


if __name__ == "__main__":
    key = jax.random.PRNGKey(0)
    kx1, kx2, kp = jax.random.split(key, 3)
    embedding_dim = 32
    w1, b1, w2, b2 = init_params(kp, embedding_dim)

    # One-time param prep (hidden 100 -> 128 pad), f32 and bf16-weight variants.
    pw1, pb1, pw2, pb2 = prepare_params(w1, b1, w2, b2, use_bf16=False)
    bw1, bb1, bw2, bb2 = prepare_params(w1, b1, w2, b2, use_bf16=True)

    # Case 1: tiny batch, single grid step, f32 end-to-end (tight check).
    x1 = jax.random.normal(kx1, (8, embedding_dim), jnp.float32)
    out1 = jax.block_until_ready(stance_detection_forward(x1, pw1, pb1, pw2, pb2))
    assert out1.shape == (8, N_CLASSES)
    assert jnp.allclose(out1, _reference(x1, w1, b1, w2, b2), atol=1e-5), "f32 mismatch"

    # Case 2: ragged batch (B=13, tb=8) -> multi-step grid with a masked
    # partial last block, no wrapper-side batch pad.
    x2 = jax.random.normal(kx2, (13, embedding_dim), jnp.float32)
    out2 = jax.block_until_ready(
        stance_detection_forward(x2, pw1, pb1, pw2, pb2, block_b=8))
    assert out2.shape == (13, N_CLASSES)
    assert jnp.allclose(out2, _reference(x2, w1, b1, w2, b2), atol=1e-5), "tiled mismatch"

    # Case 3: bf16 weights, f32 x cast to bf16 inside the kernel (no extra
    # wrapper HBM pass), f32 accumulation.
    out2_bf16 = jax.block_until_ready(
        stance_detection_forward(x2, bw1, bb1, bw2, bb2, block_b=8))
    assert jnp.allclose(out2_bf16, _reference(x2, w1, b1, w2, b2),
                        atol=5e-2), "bf16 mismatch"

    print("KERNEL_OK")
</pallas_src>

<mosaic_0001>
module attributes {stable_mosaic.version = 11 : i64} {
  func.func @_stance_kernel(%arg0: i32, %arg1: memref<8x32xf32, #tpu.memory_space<vmem>>, %arg2: memref<32x128xf32, #tpu.memory_space<vmem>>, %arg3: memref<1x128xf32, #tpu.memory_space<vmem>>, %arg4: memref<128x4xf32, #tpu.memory_space<vmem>>, %arg5: memref<1x4xf32, #tpu.memory_space<vmem>>, %arg6: memref<8x4xf32, #tpu.memory_space<vmem>>) attributes {dimension_semantics = [#tpu.dimension_semantics<parallel>], iteration_bounds = array<i64: 1>, scalar_prefetch = 0 : i64, scratch_operands = 0 : i64, tpu.core_type = #tpu.core_type<tc>, window_params = [{transform_indices = @transform_0, window_bounds = array<i64: 8, 32>}, {pipeline_mode = #tpu.pipeline_mode<synchronous>, transform_indices = @transform_1, window_bounds = array<i64: 32, 128>}, {pipeline_mode = #tpu.pipeline_mode<synchronous>, transform_indices = @transform_2, window_bounds = array<i64: 1, 128>}, {pipeline_mode = #tpu.pipeline_mode<synchronous>, transform_indices = @transform_3, window_bounds = array<i64: 128, 4>}, {pipeline_mode = #tpu.pipeline_mode<synchronous>, transform_indices = @transform_4, window_bounds = array<i64: 1, 4>}, {transform_indices = @transform_5, window_bounds = array<i64: 8, 4>}]} {
    %c0 = arith.constant 0 : index
    %c0_0 = arith.constant 0 : index
    %0 = vector.load %arg1[%c0, %c0_0] : memref<8x32xf32, #tpu.memory_space<vmem>>, vector<8x32xf32>
    %c0_1 = arith.constant 0 : index
    %c0_2 = arith.constant 0 : index
    %1 = vector.load %arg2[%c0_1, %c0_2] : memref<32x128xf32, #tpu.memory_space<vmem>>, vector<32x128xf32>
    %cst = arith.constant dense<0.000000e+00> : vector<8x128xf32>
    %2 = tpu.matmul %0, %1, %cst {dimension_numbers = #tpu.dot_dimension_numbers<[1], [0], [0], [1], [0, 0, 1, 1], [], []>} : vector<8x32xf32>, vector<32x128xf32>, vector<8x128xf32> -> vector<8x128xf32>
    %c0_3 = arith.constant 0 : index
    %c0_4 = arith.constant 0 : index
    %3 = vector.load %arg3[%c0_3, %c0_4] : memref<1x128xf32, #tpu.memory_space<vmem>>, vector<1x128xf32>
    %4 = vector.broadcast %3 : vector<1x128xf32> to vector<8x128xf32>
    %5 = arith.addf %2, %4 : vector<8x128xf32>
    %cst_5 = arith.constant 0.000000e+00 : f32
    %6 = vector.broadcast %cst_5 : f32 to vector<8x128xf32>
    %7 = arith.maximumf %5, %6 : vector<8x128xf32>
    %c0_6 = arith.constant 0 : index
    %c0_7 = arith.constant 0 : index
    %8 = vector.load %arg4[%c0_6, %c0_7] : memref<128x4xf32, #tpu.memory_space<vmem>>, vector<128x4xf32>
    %cst_8 = arith.constant dense<0.000000e+00> : vector<8x4xf32>
    %9 = tpu.matmul %7, %8, %cst_8 {dimension_numbers = #tpu.dot_dimension_numbers<[1], [0], [0], [1], [0, 0, 1, 1], [], []>} : vector<8x128xf32>, vector<128x4xf32>, vector<8x4xf32> -> vector<8x4xf32>
    %c0_9 = arith.constant 0 : index
    %c0_10 = arith.constant 0 : index
    %10 = vector.load %arg5[%c0_9, %c0_10] : memref<1x4xf32, #tpu.memory_space<vmem>>, vector<1x4xf32>
    %11 = vector.broadcast %10 : vector<1x4xf32> to vector<8x4xf32>
    %12 = arith.addf %9, %11 : vector<8x4xf32>
    %cst_11 = arith.constant dense<0xFF800000> : vector<8xf32>
    %13 = vector.multi_reduction <maximumf>, %12, %cst_11 [1] : vector<8x4xf32> to vector<8xf32>
    %14 = vector.shape_cast %13 : vector<8xf32> to vector<8x1xf32>
    %15 = vector.broadcast %14 : vector<8x1xf32> to vector<8x4xf32>
    %16 = arith.subf %12, %15 : vector<8x4xf32>
    %17 = math.exp %16 : vector<8x4xf32>
    %cst_12 = arith.constant dense<0.000000e+00> : vector<8xf32>
    %18 = vector.multi_reduction <add>, %17, %cst_12 [1] : vector<8x4xf32> to vector<8xf32>
    %19 = vector.shape_cast %18 : vector<8xf32> to vector<8x1xf32>
    %20 = math.log %19 : vector<8x1xf32>
    %21 = vector.broadcast %20 : vector<8x1xf32> to vector<8x4xf32>
    %22 = arith.subf %16, %21 : vector<8x4xf32>
    %c0_13 = arith.constant 0 : index
    %c0_14 = arith.constant 0 : index
    %23 = vector.load %arg6[%c0_13, %c0_14] : memref<8x4xf32, #tpu.memory_space<vmem>>, vector<8x4xf32>
    tpu.vector_store %arg6[%c0_13, %c0_14], %22 {strides = array<i32>} : memref<8x4xf32, #tpu.memory_space<vmem>>, vector<8x4xf32>,
    return
  }
  func.func @transform_0(%arg0: i32) -> (i32, i32) {
    %c0_i32 = arith.constant 0 : i32
    %c0_i32_0 = arith.constant 0 : i32
    return %arg0, %c0_i32 : i32, i32
  }
  func.func @transform_1(%arg0: i32) -> (i32, i32) {
    %c0_i32 = arith.constant 0 : i32
    %c0_i32_0 = arith.constant 0 : i32
    %c0_i32_1 = arith.constant 0 : i32
    return %c0_i32, %c0_i32_0 : i32, i32
  }
  func.func @transform_2(%arg0: i32) -> (i32, i32) {
    %c0_i32 = arith.constant 0 : i32
    %c0_i32_0 = arith.constant 0 : i32
    %c0_i32_1 = arith.constant 0 : i32
    return %c0_i32, %c0_i32_0 : i32, i32
  }
  func.func @transform_3(%arg0: i32) -> (i32, i32) {
    %c0_i32 = arith.constant 0 : i32
    %c0_i32_0 = arith.constant 0 : i32
    %c0_i32_1 = arith.constant 0 : i32
    return %c0_i32, %c0_i32_0 : i32, i32
  }
  func.func @transform_4(%arg0: i32) -> (i32, i32) {
    %c0_i32 = arith.constant 0 : i32
    %c0_i32_0 = arith.constant 0 : i32
    %c0_i32_1 = arith.constant 0 : i32
    return %c0_i32, %c0_i32_0 : i32, i32
  }
  func.func @transform_5(%arg0: i32) -> (i32, i32) {
    %c0_i32 = arith.constant 0 : i32
    %c0_i32_0 = arith.constant 0 : i32
    return %arg0, %c0_i32 : i32, i32
  }
}

</mosaic_0001>

<bundles_post_ra>
// kernel: tpu_custom_call.1
= control target key start
LH: loop header
LB: loop body
LE: loop exit
PB: predicated region body
PF: predicated region fallthrough
CT: control target
= control target key end

     0   :  { %vm29_vm0 = vcmask 261120   ;;  %vm94_vm1 = vcmask 31744   ;;  %s224_s1 = inlined_call_operand.vmem [shape: f32[32,128], index: 1, kind: input, shape index: {}]   ;;  %s225_s3 = inlined_call_operand.vmem [shape: f32[128,4], index: 3, kind: input, shape index: {}]   ;;  %s226_s0 = inlined_call_operand.vmem [shape: f32[8,32], index: 0, kind: input, shape index: {}]   ;;  %s227_s2 = inlined_call_operand.vmem [shape: f32[1,128], index: 2, kind: input, shape index: {}]   ;;  %s228_s4 = inlined_call_operand.vmem [shape: f32[1,4], index: 4, kind: input, shape index: {}]   ;;  %s229_s5 = inlined_call_operand.vmem [shape: f32[8,4], index: 5, kind: output, shape index: {}]  }
   0x1   :  { %v24_v0 = vld [vmem:[%s224_s1 + $0x18] sm:$0xff]  ;;  %v23_v1 = vld [vmem:[%s224_s1 + $0x10] sm:$0xff]  ;;  %v22_v3 = vld [vmem:[%s224_s1 + $0x8] sm:$0xff] }
   0x2   :  { %45 = vmatpush.msra.mxu0 %v24_v0  ;;  %v69_v2 = vld [vmem:[%s225_s3 + $0x78] sm:$0xff]  ;;  %v68_v4 = vld [vmem:[%s225_s3 + $0x70] sm:$0xff]  ;;  %v67_v5 = vld [vmem:[%s225_s3 + $0x68] sm:$0xff] }
   0x3   :  { %74 = vmatpush.msra.mxu1 %v69_v2  ;;  %v21_v6 = vld [vmem:[%s224_s1] sm:$0xff]  ;;  %v65_v9 = vld [vmem:[%s225_s3 + $0x58] sm:$0xff]  ;;  %v64_v10 = vld [vmem:[%s225_s3 + $0x50] sm:$0xff] }
   0x4   :  { %46 = vmatpush.msra.mxu0 %v23_v1  ;;  %v20_v7 = vld [vmem:[%s226_s0] sm:$0xff]  ;;  %v63_v11 = vld [vmem:[%s225_s3 + $0x48] sm:$0xff]  ;;  %v61_v13 = vld [vmem:[%s225_s3 + $0x38] sm:$0xff] }
   0x5   :  { %75 = vmatpush.msra.mxu1 %v68_v4  ;;  %v66_v8 = vld [vmem:[%s225_s3 + $0x60] sm:$0xff]  ;;  %v60_v14 = vld [vmem:[%s225_s3 + $0x30] sm:$0xff]  ;;  %v59_v15 = vld [vmem:[%s225_s3 + $0x28] sm:$0xff] }
   0x6   :  { %47 = vmatpush.msra.mxu0 %v22_v3  ;;  %v62_v12 = vld [vmem:[%s225_s3 + $0x40] sm:$0xff]  ;;  %v57_v17 = vld [vmem:[%s225_s3 + $0x18] sm:$0xff]  ;;  %v56_v18 = vld [vmem:[%s225_s3 + $0x10] sm:$0xff] }
   0x7   :  { %76 = vmatpush.msra.mxu1 %v67_v5  ;;  %v58_v16 = vld [vmem:[%s225_s3 + $0x20] sm:$0xff]  ;;  %v55_v19 = vld [vmem:[%s225_s3 + $0x8] sm:$0xff] }
   0x8   :  { %48 = vmatpush.msra.mxu0 %v21_v6  ;;  %v54_v20 = vld [vmem:[%s225_s3] sm:$0xff] }
   0x9   :  { %112 = vmatmul.msk.f32.vlgmr.msra.gmra.mxu0 %vm29_vm0, %v20_v7  ;;  %77 = vmatpush.msra.mxu1 %v66_v8  ;;  %v113_v21 = vld [vmem:[%s227_s2] ss:$0 sm:$0xff] }
   0xa   :  { %v114_v25 = vld [vmem:[%s228_s4] ss:$0 sm:$0xff] }
   0xb   :  { %78 = vmatpush.msra.mxu1 %v65_v9 }
   0xd   :  { %79 = vmatpush.msra.mxu1 %v64_v10 }
   0xf   :  { %80 = vmatpush.msra.mxu1 %v63_v11 }
  0x11   :  { %81 = vmatpush.msra.mxu1 %v62_v12 }
  0x13   :  { %82 = vmatpush.msra.mxu1 %v61_v13 }
  0x15   :  { %83 = vmatpush.msra.mxu1 %v60_v14 }
  0x17   :  { %84 = vmatpush.msra.mxu1 %v59_v15 }
  0x19   :  { %85 = vmatpush.msra.mxu1 %v58_v16 }
  0x1b   :  { %86 = vmatpush.msra.mxu1 %v57_v17 }
  0x1d   :  { %87 = vmatpush.msra.mxu1 %v56_v18 }
  0x1f   :  { %88 = vmatpush.msra.mxu1 %v55_v19 }
  0x21   :  { %89 = vmatpush.msra.mxu1 %v54_v20 }
  0x86   :  { %v50_v22 = vpop.f32.mrf.mxu0 }
  0x87   :  { %v51_v23 = vadd.f32 %v113_v21, %v50_v22 }
  0x89   :  { %v53_v24 = vmax.f32 %v51_v23, 0.0 }
  0x8b   :  { %90 = vmatmul.f32.vlgmr.msra.gmra.mxu1 %v53_v24 }
 0x108   :  { %v91_v26 = vpop.f32.mrf.mxu1 }
 0x109   :  { %v92_v27 = vadd.f32 %v114_v25, %v91_v26 }
 0x10b   :  { %v95_v28 = vsel %vm94_vm1, %v92_v27, -inf }
 0x10c   :  { %96 = vmax.xlane.f32.xlu0 %v95_v28 }
 0x17f   :  { %v97_v29 = vpop.xlane.xlu0 %96 }
 0x180   :  { %v98_v30 = vsub.f32 %v92_v27, %v97_v29 }
 0x182   :  { %v99_v31 = vmul.f32 1.442695, %v98_v30 }
 0x184   :  { %115 = vpow2.f32 %v99_v31 }
 0x18a   :  { %v116_v32 = vpop.eup %115 }
 0x18b   :  { %v101_v33 = vsel %vm94_vm1, %v116_v32, 0.0 }
 0x18c   :  { %102 = vadd.xlane.f32.xlu0 %v101_v33 }
 0x1ff   :  { %v103_v34 = vpop.xlane.xlu0 %102 }
 0x200   :  { %117 = vlog2.f32 %v103_v34 }
 0x206   :  { %v118_v35 = vpop.eup %117 }
 0x207   :  { %v105_v36 = vmul.f32 0.6931472, %v118_v35 }
 0x209   :  { %v106_v37 = vsub.f32 %v98_v30, %v105_v36 }
 0x20b   :  { %107 = vst.msk [vmem:[%s229_s5] sm:$0xff] %vm94_vm1, %v106_v37 }

</bundles_post_ra>
